<compile_context>
chip_gen: v7x
topology: tpu7x:2x2x1
jax: 0.10.0
libtpu: 0.0.40
codegen_flags: <defaults>
</compile_context>

<pallas_src>
import functools

import numpy as np
import jax
import jax.numpy as jnp
from jax import lax
from jax.experimental import pallas as pl
from jax.experimental.pallas import tpu as pltpu

# ---- module hyper-parameters (from __init__ defaults) -----------------------
K_MAX = 25.0                 # self.k
KERNEL_SIZES = (7, 13, 25)   # self.kernel_sizes (odd, nested)
SOBEL_THRESHOLD = 0.4        # self.sobel_threshold
IGNORE_INDEX = None          # self.ignore_index (None -> the single scribble channel is used)

# The nested-dilation collapse (pseudo == edge & dilated_max) is valid only while the kernel
# sizes are nested and len(KERNEL_SIZES) < K_MAX (so the `count < k` gate can never trigger).
assert len(KERNEL_SIZES) < K_MAX
assert list(KERNEL_SIZES) == sorted(KERNEL_SIZES)
_PAD = max(KERNEL_SIZES) // 2          # 12


# -----------------------------------------------------------------------------
# In-kernel stencil / dilation helpers (all (H,W)-sized, VPU/XLU only).
# -----------------------------------------------------------------------------
def _shift_zero(x, d, axis, idx):
    """y[i] = x[i + d] along `axis`, zero-filled at the ends (no cyclic wrap).
    `idx` is a pre-materialized broadcasted_iota along `axis` (shared across calls)."""
    n = x.shape[axis]
    if d >= 0:
        rolled = pltpu.roll(x, n - d, axis=axis)   # rolled[i] = x[(i + d) mod n]
        valid = idx < (n - d)
    else:
        rolled = pltpu.roll(x, -d, axis=axis)      # rolled[i] = x[(i + d) mod n]
        valid = idx >= (-d)
    return jnp.where(valid, rolled, 0.0)


def _half_window_or(m, pad, sign, axis, idx):
    """OR over the one-sided window {i, i+sign, ..., i+sign*pad} (width pad+1) of an f32 {0,1}
    mask with zero padding, built by log-step doubling (4 rolls for pad=12).  Exact under
    zero padding because one-sided windows that fall off the array are entirely zero."""
    out = m
    width = 1
    while width < pad + 1:
        step = min(width, pad + 1 - width)
        out = jnp.maximum(out, _shift_zero(out, sign * step, axis, idx))
        width += step
    return out


def _box_or_axis(m, pad, axis, idx):
    """Centered OR over a (2*pad+1)-wide window along `axis` (zero padding)."""
    fwd = _half_window_or(m, pad, +1, axis, idx)
    bwd = _half_window_or(m, pad, -1, axis, idx)
    return jnp.maximum(fwd, bwd)


# -----------------------------------------------------------------------------
# Pallas kernel: one batch element per grid step.
# -----------------------------------------------------------------------------
def _spobe_kernel(img_ref, scr_ref, out_ref, *, true_w):
    # img_ref: (1, 3, H, Wp) f32   scr_ref: (1, H, Wp) f32   out_ref: (1, 1, H, Wp) f32
    _, _, H, Wp = img_ref.shape

    r = img_ref[0, 0]
    g = img_ref[0, 1]
    b = img_ref[0, 2]
    gray = 0.299 * r + 0.587 * g + 0.114 * b            # cv2.cvtColor RGB2GRAY

    # Shared index planes (materialized once; reused by all Sobel border masks and by the
    # dilation zero-fill masks).
    row = lax.broadcasted_iota(jnp.int32, (H, Wp), 0)
    col = lax.broadcasted_iota(jnp.int32, (H, Wp), 1)
    col_first = col == 0
    col_last = col == true_w - 1
    row_first = row == 0
    row_last = row == H - 1

    # ---- Sobel ksize=3 (reflect-101) as separable [1,2,1] x [-1,0,1] stencils ----
    # The +/-1 lane rolls of `gray` are shared by both W-direction stencils (6 rolls total).
    wp = pltpu.roll(gray, Wp - 1, axis=1)                # gray[:, j+1]
    wm = pltpu.roll(gray, 1, axis=1)                     # gray[:, j-1]
    # [-1, 0, 1] along W; under reflect-101 the derivative is exactly 0 on the border cols.
    dW = jnp.where(col_first | col_last, 0.0, wp - wm)
    # [1, 2, 1] along W; reflect-101: x[-1] -> x[1], x[W] -> x[W-2].
    sW = jnp.where(col_first, 2.0 * (gray + wp),
                   jnp.where(col_last, 2.0 * (gray + wm), wm + 2.0 * gray + wp))

    # gx = smooth along H of dW.
    dWp = pltpu.roll(dW, H - 1, axis=0)                  # dW[i+1, :]
    dWm = pltpu.roll(dW, 1, axis=0)                      # dW[i-1, :]
    gx = jnp.where(row_first, 2.0 * (dW + dWp),
                   jnp.where(row_last, 2.0 * (dW + dWm), dWm + 2.0 * dW + dWp))
    # gy = derivative along H of sW.
    sWp = pltpu.roll(sW, H - 1, axis=0)
    sWm = pltpu.roll(sW, 1, axis=0)
    gy = jnp.where(row_first | row_last, 0.0, sWp - sWm)

    # edge = (|grad| / (max|grad| + 1e-8)) > thr, evaluated on squared magnitudes:
    # one scalar sqrt, no per-element sqrt / divide.  Columns >= true_w are lane padding.
    mag2 = gx * gx + gy * gy
    mag2_valid = jnp.where(col < true_w, mag2, 0.0)
    thr = SOBEL_THRESHOLD * (jnp.sqrt(jnp.max(mag2_valid)) + 1e-8)
    edge = mag2 > thr * thr

    # ---- 25x25 box dilation of (scribble > 0) via the roll/OR cascade ----
    # Matches F.conv2d(scribble, ones(25,25), padding=12) > 0 for nonnegative scribbles.
    # TODO(synk): if scribbles may carry negative markers, the conv-sum sign could differ.
    m = (scr_ref[0] > 0.0).astype(jnp.float32)
    m = _box_or_axis(m, _PAD, axis=1, idx=col)
    m = _box_or_axis(m, _PAD, axis=0, idx=row)
    dilated = m > 0.0

    # IGNORE_INDEX is None and C == 1 after unsqueeze(1), so the single channel is kept.
    # pseudo == edge & dilated_25 (nested-dilation collapse; see header note).
    out_ref[0, 0] = jnp.where(edge & dilated, 1.0, 0.0).astype(jnp.float32)


# -----------------------------------------------------------------------------
# Wrapper.
# -----------------------------------------------------------------------------
def _vmem_limit_bytes(H, Wp):
    # double-buffered image/scribble/output tiles + ~16 live (H, Wp) f32/i32 intermediates
    est = (2 * (3 + 1 + 1) * 4 + 16 * 4) * H * Wp + (2 << 20)
    try:
        cap = int(pltpu.get_tpu_info().vmem_capacity_bytes)
    except Exception:
        cap = 64 << 20                       # v7x per-TC VMEM (smallest generation)
    # Floor at the default scoped limit; never request more than ~80% of physical VMEM.
    return int(min(max(est, 32 << 20), (cap * 4) // 5))


@jax.jit
def spobe_forward(images, scribbles):
    """images: (B, 3, H, W) float32; scribbles: (B, H, W). Returns (B, 1, H, W) float32."""
    B, C, H, W = images.shape
    assert C == 3
    images = images.astype(jnp.float32)
    scribbles = scribbles.astype(jnp.float32)

    # Lane-dense stores: pad W up to a multiple of 128; the kernel gets the true width
    # statically (border handling / normalization ignore the pad) and the output is cropped.
    Wp = ((W + 127) // 128) * 128
    if Wp != W:
        images = jnp.pad(images, ((0, 0), (0, 0), (0, 0), (0, Wp - W)))
        scribbles = jnp.pad(scribbles, ((0, 0), (0, 0), (0, Wp - W)))

    # TODO(synk): for production-sized images (>= 1024^2 the whole-image tile no longer fits
    # v7x's 64 MiB VMEM) split into a two-pass kernel (pass 1: Sobel magnitude + per-image
    # max; pass 2: threshold + halo'd 25-tap dilation) so a "parallel" H-tiled spatial grid
    # axis can be added; the per-image global max in the normalization blocks a single-pass
    # spatially tiled layout.

    grid_spec = pltpu.PrefetchScalarGridSpec(
        num_scalar_prefetch=0,
        grid=(B,),
        in_specs=[
            pl.BlockSpec((1, 3, H, Wp), lambda b: (b, 0, 0, 0)),   # images
            pl.BlockSpec((1, H, Wp), lambda b: (b, 0, 0)),         # scribbles
        ],
        out_specs=pl.BlockSpec((1, 1, H, Wp), lambda b: (b, 0, 0, 0)),
    )

    out = pl.pallas_call(
        functools.partial(_spobe_kernel, true_w=W),
        out_shape=jax.ShapeDtypeStruct((B, 1, H, Wp), jnp.float32),
        grid_spec=grid_spec,
        compiler_params=pltpu.CompilerParams(
            dimension_semantics=("parallel",),        # batch elems independent (v7x 2 TCs)
            vmem_limit_bytes=_vmem_limit_bytes(H, Wp),
        ),
    )(images, scribbles)
    return out[..., :W]


# -----------------------------------------------------------------------------
# Independent numpy reference (mirrors the PyTorch/cv2 semantics: all 3 kernel
# sizes + count bookkeeping — this also validates the nested-dilation collapse).
# -----------------------------------------------------------------------------
def _ref_forward(images, scribbles):
    images = np.asarray(images, np.float32)
    scribbles = np.asarray(scribbles, np.float32)
    B, _, H, W = images.shape
    Kx = np.array([[-1, 0, 1], [-2, 0, 2], [-1, 0, 1]], np.float32)
    Ky = Kx.T
    edges = np.zeros((B, 1, H, W), np.float32)
    mag_norm = np.zeros((B, 1, H, W), np.float32)
    for b in range(B):
        img = images[b].transpose(1, 2, 0)
        gray = 0.299 * img[..., 0] + 0.587 * img[..., 1] + 0.114 * img[..., 2]
        gp = np.pad(gray, 1, mode="reflect")  # == cv2 BORDER_REFLECT_101
        gx = np.zeros((H, W), np.float32)
        gy = np.zeros((H, W), np.float32)
        for y in range(H):
            for x in range(W):
                win = gp[y:y + 3, x:x + 3]
                gx[y, x] = (win * Kx).sum()
                gy[y, x] = (win * Ky).sum()
        mag = np.sqrt(gx ** 2 + gy ** 2)
        mag = mag / (mag.max() + 1e-8)
        mag_norm[b, 0] = mag
        edges[b, 0] = (mag > SOBEL_THRESHOLD).astype(np.float32)

    scr = scribbles[:, None]
    pseudo = np.zeros_like(scr, np.float32)
    count = np.zeros_like(scr, np.float32)
    for ks in KERNEL_SIZES:
        pad = ks // 2
        sp = np.pad(scribbles, ((0, 0), (pad, pad), (pad, pad)))
        dil = np.zeros((B, H, W), np.float32)
        for y in range(H):
            for x in range(W):
                dil[:, y, x] = sp[:, y:y + ks, x:x + ks].sum(axis=(1, 2))
        dilated = (dil > 0)[:, None]
        eligible = (edges > 0) & (count < K_MAX) & dilated
        pseudo = np.maximum(pseudo, edges * eligible)
        count = count + eligible
        count = np.minimum(count, K_MAX)
    return pseudo.astype(np.float32), mag_norm


if __name__ == "__main__":
    key = jax.random.PRNGKey(0)
    # First shape exercises the padded (W < 128) path, second a natively lane-dense W == 128.
    for (B, H, W) in [(2, 16, 16), (1, 16, 128)]:
        key, k_img, k_scr = jax.random.split(key, 3)
        images = jax.random.uniform(k_img, (B, 3, H, W), dtype=jnp.float32)
        scribbles = (jax.random.uniform(k_scr, (B, H, W)) < 0.05).astype(jnp.float32)

        out = jax.block_until_ready(spobe_forward(images, scribbles))
        ref, mag_norm = _ref_forward(np.asarray(images), np.asarray(scribbles))

        # The output is a hard threshold of the normalized Sobel magnitude; exclude pixels
        # whose magnitude is within float noise of the threshold from the exact comparison.
        safe = np.abs(mag_norm - SOBEL_THRESHOLD) > 1e-4
        assert safe.mean() > 0.99
        np.testing.assert_allclose(np.asarray(out)[safe], ref[safe], atol=1e-5)
    print("KERNEL_OK")
</pallas_src>

<mosaic_0001>
module attributes {stable_mosaic.version = 11 : i64} {
  func.func @_spobe_kernel(%arg0: i32, %arg1: memref<1x3x16x128xf32, #tpu.memory_space<vmem>>, %arg2: memref<1x16x128xf32, #tpu.memory_space<vmem>>, %arg3: memref<1x1x16x128xf32, #tpu.memory_space<vmem>>) attributes {dimension_semantics = [#tpu.dimension_semantics<parallel>], iteration_bounds = array<i64: 2>, scalar_prefetch = 0 : i64, scratch_operands = 0 : i64, tpu.core_type = #tpu.core_type<tc>, window_params = [{transform_indices = @transform_0, window_bounds = array<i64: 1, 3, 16, 128>}, {transform_indices = @transform_1, window_bounds = array<i64: 1, 16, 128>}, {transform_indices = @transform_2, window_bounds = array<i64: 1, 1, 16, 128>}]} {
    %c0 = arith.constant 0 : index
    %c0_0 = arith.constant 0 : index
    %c0_1 = arith.constant 0 : index
    %c0_2 = arith.constant 0 : index
    %0 = vector.load %arg1[%c0, %c0_0, %c0_1, %c0_2] : memref<1x3x16x128xf32, #tpu.memory_space<vmem>>, vector<1x1x16x128xf32>
    %1 = vector.shape_cast %0 : vector<1x1x16x128xf32> to vector<16x128xf32>
    %c0_3 = arith.constant 0 : index
    %c1 = arith.constant 1 : index
    %c0_4 = arith.constant 0 : index
    %c0_5 = arith.constant 0 : index
    %2 = vector.load %arg1[%c0_3, %c1, %c0_4, %c0_5] : memref<1x3x16x128xf32, #tpu.memory_space<vmem>>, vector<1x1x16x128xf32>
    %3 = vector.shape_cast %2 : vector<1x1x16x128xf32> to vector<16x128xf32>
    %c0_6 = arith.constant 0 : index
    %c2 = arith.constant 2 : index
    %c0_7 = arith.constant 0 : index
    %c0_8 = arith.constant 0 : index
    %4 = vector.load %arg1[%c0_6, %c2, %c0_7, %c0_8] : memref<1x3x16x128xf32, #tpu.memory_space<vmem>>, vector<1x1x16x128xf32>
    %5 = vector.shape_cast %4 : vector<1x1x16x128xf32> to vector<16x128xf32>
    %cst = arith.constant 2.990000e-01 : f32
    %6 = vector.broadcast %cst : f32 to vector<16x128xf32>
    %7 = arith.mulf %6, %1 : vector<16x128xf32>
    %cst_9 = arith.constant 5.870000e-01 : f32
    %8 = vector.broadcast %cst_9 : f32 to vector<16x128xf32>
    %9 = arith.mulf %8, %3 : vector<16x128xf32>
    %10 = arith.addf %7, %9 : vector<16x128xf32>
    %cst_10 = arith.constant 1.140000e-01 : f32
    %11 = vector.broadcast %cst_10 : f32 to vector<16x128xf32>
    %12 = arith.mulf %11, %5 : vector<16x128xf32>
    %13 = arith.addf %10, %12 : vector<16x128xf32>
    %14 = tpu.iota {dimensions = array<i32: 0>} : vector<16x128xi32>
    %15 = tpu.iota {dimensions = array<i32: 1>} : vector<16x128xi32>
    %c0_i32 = arith.constant 0 : i32
    %16 = vector.broadcast %c0_i32 : i32 to vector<16x128xi32>
    %17 = arith.cmpi eq, %15, %16 : vector<16x128xi32>
    %c15_i32 = arith.constant 15 : i32
    %18 = vector.broadcast %c15_i32 : i32 to vector<16x128xi32>
    %19 = arith.cmpi eq, %15, %18 : vector<16x128xi32>
    %c0_i32_11 = arith.constant 0 : i32
    %20 = vector.broadcast %c0_i32_11 : i32 to vector<16x128xi32>
    %21 = arith.cmpi eq, %14, %20 : vector<16x128xi32>
    %c15_i32_12 = arith.constant 15 : i32
    %22 = vector.broadcast %c15_i32_12 : i32 to vector<16x128xi32>
    %23 = arith.cmpi eq, %14, %22 : vector<16x128xi32>
    %c127_i32 = arith.constant 127 : i32
    %24 = tpu.dynamic_rotate %13 by %c127_i32 dim 1 : vector<16x128xf32>, i32 -> vector<16x128xf32>
    %c1_i32 = arith.constant 1 : i32
    %25 = tpu.dynamic_rotate %13 by %c1_i32 dim 1 : vector<16x128xf32>, i32 -> vector<16x128xf32>
    %26 = arith.ori %17, %19 : vector<16x128xi1>
    %27 = arith.subf %24, %25 : vector<16x128xf32>
    %cst_13 = arith.constant 0.000000e+00 : f32
    %28 = vector.broadcast %cst_13 : f32 to vector<16x128xf32>
    %29 = arith.select %26, %28, %27 : vector<16x128xi1>, vector<16x128xf32>
    %30 = arith.addf %13, %24 : vector<16x128xf32>
    %cst_14 = arith.constant 2.000000e+00 : f32
    %31 = vector.broadcast %cst_14 : f32 to vector<16x128xf32>
    %32 = arith.mulf %31, %30 : vector<16x128xf32>
    %33 = arith.addf %13, %25 : vector<16x128xf32>
    %cst_15 = arith.constant 2.000000e+00 : f32
    %34 = vector.broadcast %cst_15 : f32 to vector<16x128xf32>
    %35 = arith.mulf %34, %33 : vector<16x128xf32>
    %cst_16 = arith.constant 2.000000e+00 : f32
    %36 = vector.broadcast %cst_16 : f32 to vector<16x128xf32>
    %37 = arith.mulf %36, %13 : vector<16x128xf32>
    %38 = arith.addf %25, %37 : vector<16x128xf32>
    %39 = arith.addf %38, %24 : vector<16x128xf32>
    %40 = arith.select %19, %35, %39 : vector<16x128xi1>, vector<16x128xf32>
    %41 = arith.select %17, %32, %40 : vector<16x128xi1>, vector<16x128xf32>
    %c15_i32_17 = arith.constant 15 : i32
    %42 = tpu.dynamic_rotate %29 by %c15_i32_17 dim 0 : vector<16x128xf32>, i32 -> vector<16x128xf32>
    %c1_i32_18 = arith.constant 1 : i32
    %43 = tpu.dynamic_rotate %29 by %c1_i32_18 dim 0 : vector<16x128xf32>, i32 -> vector<16x128xf32>
    %44 = arith.addf %29, %42 : vector<16x128xf32>
    %cst_19 = arith.constant 2.000000e+00 : f32
    %45 = vector.broadcast %cst_19 : f32 to vector<16x128xf32>
    %46 = arith.mulf %45, %44 : vector<16x128xf32>
    %47 = arith.addf %29, %43 : vector<16x128xf32>
    %cst_20 = arith.constant 2.000000e+00 : f32
    %48 = vector.broadcast %cst_20 : f32 to vector<16x128xf32>
    %49 = arith.mulf %48, %47 : vector<16x128xf32>
    %cst_21 = arith.constant 2.000000e+00 : f32
    %50 = vector.broadcast %cst_21 : f32 to vector<16x128xf32>
    %51 = arith.mulf %50, %29 : vector<16x128xf32>
    %52 = arith.addf %43, %51 : vector<16x128xf32>
    %53 = arith.addf %52, %42 : vector<16x128xf32>
    %54 = arith.select %23, %49, %53 : vector<16x128xi1>, vector<16x128xf32>
    %55 = arith.select %21, %46, %54 : vector<16x128xi1>, vector<16x128xf32>
    %c15_i32_22 = arith.constant 15 : i32
    %56 = tpu.dynamic_rotate %41 by %c15_i32_22 dim 0 : vector<16x128xf32>, i32 -> vector<16x128xf32>
    %c1_i32_23 = arith.constant 1 : i32
    %57 = tpu.dynamic_rotate %41 by %c1_i32_23 dim 0 : vector<16x128xf32>, i32 -> vector<16x128xf32>
    %58 = arith.ori %21, %23 : vector<16x128xi1>
    %59 = arith.subf %56, %57 : vector<16x128xf32>
    %cst_24 = arith.constant 0.000000e+00 : f32
    %60 = vector.broadcast %cst_24 : f32 to vector<16x128xf32>
    %61 = arith.select %58, %60, %59 : vector<16x128xi1>, vector<16x128xf32>
    %62 = arith.mulf %55, %55 : vector<16x128xf32>
    %63 = arith.mulf %61, %61 : vector<16x128xf32>
    %64 = arith.addf %62, %63 : vector<16x128xf32>
    %c16_i32 = arith.constant 16 : i32
    %65 = vector.broadcast %c16_i32 : i32 to vector<16x128xi32>
    %66 = arith.cmpi slt, %15, %65 : vector<16x128xi32>
    %cst_25 = arith.constant 0.000000e+00 : f32
    %67 = vector.broadcast %cst_25 : f32 to vector<16x128xf32>
    %68 = arith.select %66, %64, %67 : vector<16x128xi1>, vector<16x128xf32>
    %69 = vector.shape_cast %68 : vector<16x128xf32> to vector<1x16x128xf32>
    %cst_26 = arith.constant dense<0xFF800000> : vector<1xf32>
    %70 = vector.multi_reduction <maximumf>, %69, %cst_26 [1, 2] : vector<1x16x128xf32> to vector<1xf32>
    %71 = vector.shape_cast %70 : vector<1xf32> to vector<1x1x1xf32>
    %72 = vector.extract %71[0, 0, 0] : f32 from vector<1x1x1xf32>
    %73 = math.sqrt %72 : f32
    %cst_27 = arith.constant 9.99999993E-9 : f32
    %74 = arith.addf %73, %cst_27 : f32
    %cst_28 = arith.constant 4.000000e-01 : f32
    %75 = arith.mulf %cst_28, %74 : f32
    %76 = arith.mulf %75, %75 : f32
    %77 = vector.broadcast %76 : f32 to vector<16x128xf32>
    %78 = arith.cmpf ogt, %64, %77 : vector<16x128xf32>
    %c0_29 = arith.constant 0 : index
    %c0_30 = arith.constant 0 : index
    %c0_31 = arith.constant 0 : index
    %79 = vector.load %arg2[%c0_29, %c0_30, %c0_31] : memref<1x16x128xf32, #tpu.memory_space<vmem>>, vector<1x16x128xf32>
    %80 = vector.shape_cast %79 : vector<1x16x128xf32> to vector<16x128xf32>
    %cst_32 = arith.constant 0.000000e+00 : f32
    %81 = vector.broadcast %cst_32 : f32 to vector<16x128xf32>
    %82 = arith.cmpf ogt, %80, %81 : vector<16x128xf32>
    %83 = arith.extui %82 : vector<16x128xi1> to vector<16x128xi32>
    %84 = arith.sitofp %83 : vector<16x128xi32> to vector<16x128xf32>
    %c127_i32_33 = arith.constant 127 : i32
    %85 = tpu.dynamic_rotate %84 by %c127_i32_33 dim 1 : vector<16x128xf32>, i32 -> vector<16x128xf32>
    %c127_i32_34 = arith.constant 127 : i32
    %86 = vector.broadcast %c127_i32_34 : i32 to vector<16x128xi32>
    %87 = arith.cmpi slt, %15, %86 : vector<16x128xi32>
    %cst_35 = arith.constant 0.000000e+00 : f32
    %88 = vector.broadcast %cst_35 : f32 to vector<16x128xf32>
    %89 = arith.select %87, %85, %88 : vector<16x128xi1>, vector<16x128xf32>
    %90 = arith.maximumf %84, %89 : vector<16x128xf32>
    %c126_i32 = arith.constant 126 : i32
    %91 = tpu.dynamic_rotate %90 by %c126_i32 dim 1 : vector<16x128xf32>, i32 -> vector<16x128xf32>
    %c126_i32_36 = arith.constant 126 : i32
    %92 = vector.broadcast %c126_i32_36 : i32 to vector<16x128xi32>
    %93 = arith.cmpi slt, %15, %92 : vector<16x128xi32>
    %cst_37 = arith.constant 0.000000e+00 : f32
    %94 = vector.broadcast %cst_37 : f32 to vector<16x128xf32>
    %95 = arith.select %93, %91, %94 : vector<16x128xi1>, vector<16x128xf32>
    %96 = arith.maximumf %90, %95 : vector<16x128xf32>
    %c124_i32 = arith.constant 124 : i32
    %97 = tpu.dynamic_rotate %96 by %c124_i32 dim 1 : vector<16x128xf32>, i32 -> vector<16x128xf32>
    %c124_i32_38 = arith.constant 124 : i32
    %98 = vector.broadcast %c124_i32_38 : i32 to vector<16x128xi32>
    %99 = arith.cmpi slt, %15, %98 : vector<16x128xi32>
    %cst_39 = arith.constant 0.000000e+00 : f32
    %100 = vector.broadcast %cst_39 : f32 to vector<16x128xf32>
    %101 = arith.select %99, %97, %100 : vector<16x128xi1>, vector<16x128xf32>
    %102 = arith.maximumf %96, %101 : vector<16x128xf32>
    %c123_i32 = arith.constant 123 : i32
    %103 = tpu.dynamic_rotate %102 by %c123_i32 dim 1 : vector<16x128xf32>, i32 -> vector<16x128xf32>
    %c123_i32_40 = arith.constant 123 : i32
    %104 = vector.broadcast %c123_i32_40 : i32 to vector<16x128xi32>
    %105 = arith.cmpi slt, %15, %104 : vector<16x128xi32>
    %cst_41 = arith.constant 0.000000e+00 : f32
    %106 = vector.broadcast %cst_41 : f32 to vector<16x128xf32>
    %107 = arith.select %105, %103, %106 : vector<16x128xi1>, vector<16x128xf32>
    %108 = arith.maximumf %102, %107 : vector<16x128xf32>
    %c1_i32_42 = arith.constant 1 : i32
    %109 = tpu.dynamic_rotate %84 by %c1_i32_42 dim 1 : vector<16x128xf32>, i32 -> vector<16x128xf32>
    %c1_i32_43 = arith.constant 1 : i32
    %110 = vector.broadcast %c1_i32_43 : i32 to vector<16x128xi32>
    %111 = arith.cmpi sge, %15, %110 : vector<16x128xi32>
    %cst_44 = arith.constant 0.000000e+00 : f32
    %112 = vector.broadcast %cst_44 : f32 to vector<16x128xf32>
    %113 = arith.select %111, %109, %112 : vector<16x128xi1>, vector<16x128xf32>
    %114 = arith.maximumf %84, %113 : vector<16x128xf32>
    %c2_i32 = arith.constant 2 : i32
    %115 = tpu.dynamic_rotate %114 by %c2_i32 dim 1 : vector<16x128xf32>, i32 -> vector<16x128xf32>
    %c2_i32_45 = arith.constant 2 : i32
    %116 = vector.broadcast %c2_i32_45 : i32 to vector<16x128xi32>
    %117 = arith.cmpi sge, %15, %116 : vector<16x128xi32>
    %cst_46 = arith.constant 0.000000e+00 : f32
    %118 = vector.broadcast %cst_46 : f32 to vector<16x128xf32>
    %119 = arith.select %117, %115, %118 : vector<16x128xi1>, vector<16x128xf32>
    %120 = arith.maximumf %114, %119 : vector<16x128xf32>
    %c4_i32 = arith.constant 4 : i32
    %121 = tpu.dynamic_rotate %120 by %c4_i32 dim 1 : vector<16x128xf32>, i32 -> vector<16x128xf32>
    %c4_i32_47 = arith.constant 4 : i32
    %122 = vector.broadcast %c4_i32_47 : i32 to vector<16x128xi32>
    %123 = arith.cmpi sge, %15, %122 : vector<16x128xi32>
    %cst_48 = arith.constant 0.000000e+00 : f32
    %124 = vector.broadcast %cst_48 : f32 to vector<16x128xf32>
    %125 = arith.select %123, %121, %124 : vector<16x128xi1>, vector<16x128xf32>
    %126 = arith.maximumf %120, %125 : vector<16x128xf32>
    %c5_i32 = arith.constant 5 : i32
    %127 = tpu.dynamic_rotate %126 by %c5_i32 dim 1 : vector<16x128xf32>, i32 -> vector<16x128xf32>
    %c5_i32_49 = arith.constant 5 : i32
    %128 = vector.broadcast %c5_i32_49 : i32 to vector<16x128xi32>
    %129 = arith.cmpi sge, %15, %128 : vector<16x128xi32>
    %cst_50 = arith.constant 0.000000e+00 : f32
    %130 = vector.broadcast %cst_50 : f32 to vector<16x128xf32>
    %131 = arith.select %129, %127, %130 : vector<16x128xi1>, vector<16x128xf32>
    %132 = arith.maximumf %126, %131 : vector<16x128xf32>
    %133 = arith.maximumf %108, %132 : vector<16x128xf32>
    %c15_i32_51 = arith.constant 15 : i32
    %134 = tpu.dynamic_rotate %133 by %c15_i32_51 dim 0 : vector<16x128xf32>, i32 -> vector<16x128xf32>
    %c15_i32_52 = arith.constant 15 : i32
    %135 = vector.broadcast %c15_i32_52 : i32 to vector<16x128xi32>
    %136 = arith.cmpi slt, %14, %135 : vector<16x128xi32>
    %cst_53 = arith.constant 0.000000e+00 : f32
    %137 = vector.broadcast %cst_53 : f32 to vector<16x128xf32>
    %138 = arith.select %136, %134, %137 : vector<16x128xi1>, vector<16x128xf32>
    %139 = arith.maximumf %133, %138 : vector<16x128xf32>
    %c14_i32 = arith.constant 14 : i32
    %140 = tpu.dynamic_rotate %139 by %c14_i32 dim 0 : vector<16x128xf32>, i32 -> vector<16x128xf32>
    %c14_i32_54 = arith.constant 14 : i32
    %141 = vector.broadcast %c14_i32_54 : i32 to vector<16x128xi32>
    %142 = arith.cmpi slt, %14, %141 : vector<16x128xi32>
    %cst_55 = arith.constant 0.000000e+00 : f32
    %143 = vector.broadcast %cst_55 : f32 to vector<16x128xf32>
    %144 = arith.select %142, %140, %143 : vector<16x128xi1>, vector<16x128xf32>
    %145 = arith.maximumf %139, %144 : vector<16x128xf32>
    %c12_i32 = arith.constant 12 : i32
    %146 = tpu.dynamic_rotate %145 by %c12_i32 dim 0 : vector<16x128xf32>, i32 -> vector<16x128xf32>
    %c12_i32_56 = arith.constant 12 : i32
    %147 = vector.broadcast %c12_i32_56 : i32 to vector<16x128xi32>
    %148 = arith.cmpi slt, %14, %147 : vector<16x128xi32>
    %cst_57 = arith.constant 0.000000e+00 : f32
    %149 = vector.broadcast %cst_57 : f32 to vector<16x128xf32>
    %150 = arith.select %148, %146, %149 : vector<16x128xi1>, vector<16x128xf32>
    %151 = arith.maximumf %145, %150 : vector<16x128xf32>
    %c11_i32 = arith.constant 11 : i32
    %152 = tpu.dynamic_rotate %151 by %c11_i32 dim 0 : vector<16x128xf32>, i32 -> vector<16x128xf32>
    %c11_i32_58 = arith.constant 11 : i32
    %153 = vector.broadcast %c11_i32_58 : i32 to vector<16x128xi32>
    %154 = arith.cmpi slt, %14, %153 : vector<16x128xi32>
    %cst_59 = arith.constant 0.000000e+00 : f32
    %155 = vector.broadcast %cst_59 : f32 to vector<16x128xf32>
    %156 = arith.select %154, %152, %155 : vector<16x128xi1>, vector<16x128xf32>
    %157 = arith.maximumf %151, %156 : vector<16x128xf32>
    %c1_i32_60 = arith.constant 1 : i32
    %158 = tpu.dynamic_rotate %133 by %c1_i32_60 dim 0 : vector<16x128xf32>, i32 -> vector<16x128xf32>
    %c1_i32_61 = arith.constant 1 : i32
    %159 = vector.broadcast %c1_i32_61 : i32 to vector<16x128xi32>
    %160 = arith.cmpi sge, %14, %159 : vector<16x128xi32>
    %cst_62 = arith.constant 0.000000e+00 : f32
    %161 = vector.broadcast %cst_62 : f32 to vector<16x128xf32>
    %162 = arith.select %160, %158, %161 : vector<16x128xi1>, vector<16x128xf32>
    %163 = arith.maximumf %133, %162 : vector<16x128xf32>
    %c2_i32_63 = arith.constant 2 : i32
    %164 = tpu.dynamic_rotate %163 by %c2_i32_63 dim 0 : vector<16x128xf32>, i32 -> vector<16x128xf32>
    %c2_i32_64 = arith.constant 2 : i32
    %165 = vector.broadcast %c2_i32_64 : i32 to vector<16x128xi32>
    %166 = arith.cmpi sge, %14, %165 : vector<16x128xi32>
    %cst_65 = arith.constant 0.000000e+00 : f32
    %167 = vector.broadcast %cst_65 : f32 to vector<16x128xf32>
    %168 = arith.select %166, %164, %167 : vector<16x128xi1>, vector<16x128xf32>
    %169 = arith.maximumf %163, %168 : vector<16x128xf32>
    %c4_i32_66 = arith.constant 4 : i32
    %170 = tpu.dynamic_rotate %169 by %c4_i32_66 dim 0 : vector<16x128xf32>, i32 -> vector<16x128xf32>
    %c4_i32_67 = arith.constant 4 : i32
    %171 = vector.broadcast %c4_i32_67 : i32 to vector<16x128xi32>
    %172 = arith.cmpi sge, %14, %171 : vector<16x128xi32>
    %cst_68 = arith.constant 0.000000e+00 : f32
    %173 = vector.broadcast %cst_68 : f32 to vector<16x128xf32>
    %174 = arith.select %172, %170, %173 : vector<16x128xi1>, vector<16x128xf32>
    %175 = arith.maximumf %169, %174 : vector<16x128xf32>
    %c5_i32_69 = arith.constant 5 : i32
    %176 = tpu.dynamic_rotate %175 by %c5_i32_69 dim 0 : vector<16x128xf32>, i32 -> vector<16x128xf32>
    %c5_i32_70 = arith.constant 5 : i32
    %177 = vector.broadcast %c5_i32_70 : i32 to vector<16x128xi32>
    %178 = arith.cmpi sge, %14, %177 : vector<16x128xi32>
    %cst_71 = arith.constant 0.000000e+00 : f32
    %179 = vector.broadcast %cst_71 : f32 to vector<16x128xf32>
    %180 = arith.select %178, %176, %179 : vector<16x128xi1>, vector<16x128xf32>
    %181 = arith.maximumf %175, %180 : vector<16x128xf32>
    %182 = arith.maximumf %157, %181 : vector<16x128xf32>
    %cst_72 = arith.constant 0.000000e+00 : f32
    %183 = vector.broadcast %cst_72 : f32 to vector<16x128xf32>
    %184 = arith.cmpf ogt, %182, %183 : vector<16x128xf32>
    %185 = arith.andi %78, %184 : vector<16x128xi1>
    %cst_73 = arith.constant 1.000000e+00 : f32
    %cst_74 = arith.constant 0.000000e+00 : f32
    %186 = vector.broadcast %cst_73 : f32 to vector<16x128xf32>
    %187 = vector.broadcast %cst_74 : f32 to vector<16x128xf32>
    %188 = arith.select %185, %186, %187 : vector<16x128xi1>, vector<16x128xf32>
    %c0_75 = arith.constant 0 : index
    %c0_76 = arith.constant 0 : index
    %c0_77 = arith.constant 0 : index
    %c0_78 = arith.constant 0 : index
    %189 = vector.load %arg3[%c0_75, %c0_76, %c0_77, %c0_78] : memref<1x1x16x128xf32, #tpu.memory_space<vmem>>, vector<1x1x16x128xf32>
    %190 = vector.shape_cast %189 : vector<1x1x16x128xf32> to vector<16x128xf32>
    %191 = vector.shape_cast %188 : vector<16x128xf32> to vector<1x1x16x128xf32>
    tpu.vector_store %arg3[%c0_75, %c0_76, %c0_77, %c0_78], %191 {strides = array<i32>} : memref<1x1x16x128xf32, #tpu.memory_space<vmem>>, vector<1x1x16x128xf32>,
    return
  }
  func.func @transform_0(%arg0: i32) -> (i32, i32, i32, i32) {
    %c0_i32 = arith.constant 0 : i32
    %c0_i32_0 = arith.constant 0 : i32
    %c0_i32_1 = arith.constant 0 : i32
    %c0_i32_2 = arith.constant 0 : i32
    return %arg0, %c0_i32, %c0_i32_0, %c0_i32_1 : i32, i32, i32, i32
  }
  func.func @transform_1(%arg0: i32) -> (i32, i32, i32) {
    %c0_i32 = arith.constant 0 : i32
    %c0_i32_0 = arith.constant 0 : i32
    %c0_i32_1 = arith.constant 0 : i32
    return %arg0, %c0_i32, %c0_i32_0 : i32, i32, i32
  }
  func.func @transform_2(%arg0: i32) -> (i32, i32, i32, i32) {
    %c0_i32 = arith.constant 0 : i32
    %c0_i32_0 = arith.constant 0 : i32
    %c0_i32_1 = arith.constant 0 : i32
    %c0_i32_2 = arith.constant 0 : i32
    return %arg0, %c0_i32, %c0_i32_0, %c0_i32_1 : i32, i32, i32, i32
  }
}

</mosaic_0001>

<bundles_post_ra>
// kernel: spobe_forward.1
= control target key start
LH: loop header
LB: loop body
LE: loop exit
PB: predicated region body
PF: predicated region fallthrough
CT: control target
= control target key end

     0   :  { %7 = vsyncpa [#allocation3], 0  ;;  %s985_s0 = inlined_call_operand.vmem [shape: f32[2,3,16,128], index: 0, kind: input, shape index: {}]   ;;  %s986_s1 = inlined_call_operand.vmem [shape: f32[2,16,128], index: 1, kind: input, shape index: {}]   ;;  %s987_s2 = inlined_call_operand.hbm [shape: f32[2,1,16,128], index: 2, kind: output, shape index: {}]  }
   0x1   :  { %9 = vsyncpa [#allocation3 + $0x1], 0  ;;  %s772_s9 = smov 0   ;;  %s774_s10 = smov 0  }
   0x2   :  { %s776_s11 = smov 0   ;;  %s778_s12 = smov 0  }
   0x3 LB: > { %s793_s13 = sadd.s32 4294967295, %s743_s12   ;;  %s563_s14 = sadd.s32 4294967294, %s743_s12   ;;  %s743_s12 = sphi %s778_s12, %s993_s12   ;;  %s739_s11 = sphi %s776_s11, %s992_s11   ;;  %s735_s10 = sphi %s774_s10, %s991_s10   ;;  %s731_s9 = sphi %s772_s9, %s990_s9  }
   0x4   : > { %s797_s15 = sadd.s32 1, %s743_s12   ;;  %s74_s16 = sadd.s32 1, %s739_s11 }
   0x5   : > { %s71_s17 = ssub.s32 %s743_s12, %s797_s15  ;;  %p84_p0 = scmp.ne.s32.totalorder %s739_s11, %s735_s10 }
   0x6   : > { %p72_p1 = scmp.eq.s32.totalorder %s71_s17, 0  ;;  %p85_p2 = scmp.eq.s32.totalorder %s793_s13, 1 }
   0x7   : > { %p90_p3 = scmp.ne.s32.totalorder %s735_s10, %s731_s9  ;;  %p91_p4 = scmp.eq.s32.totalorder %s563_s14, 1 }
   0x8   : > { %s808_s18 = scalar_select %p72_p1, %s739_s11, %s74_s16  }
   0x9   : > { %p810_p5 = por %p85_p2, %p84_p0  ;;  %p814_p6 = por %p91_p4, %p90_p3 }
   0xa   : > { %p566_p7 = scmp.ge.s32.totalorder %s743_s12, 1  ;;  %p125_p8 = scmp.lt.s32.totalorder %s743_s12, 3 }
   0xc   : > { %p126_p9 = pnand %p566_p7, %p125_p8 }
   0xd   : > { %p152_p10 = scmp.lt.s32.totalorder (!%p126_p9), %s793_s13, 1  ;;  %s745_s30 = smov (!%p126_p9), 127   ;;  %v747_v18 = vmov (!%p126_p9), 0.0   ;;  %v180_v22 = vlaneseq (!%p126_p9) }
   0xe   : > { %129 = sbr.rel (%p126_p9) target bundleno = 578 (0x242), region = 28  ;;  %s746_s3 = smov (!%p126_p9), 1  }
   0xf   : > { %v830_v25 = vand.u32 (!%p126_p9), 127, %v180_v22  ;;  %v832_v30 = vshrl.u32 (!%p126_p9), %v180_v22, 7  ;;  %s748_s4 = smov (!%p126_p9), 2   ;;  %s749_s5 = smov (!%p126_p9), 126  }
  0x10   : > { %s750_s6 = smov (!%p126_p9), 124   ;;  %s751_s7 = smov (!%p126_p9), 4  }
  0x11   : > { %vm185_vm2 = vcmp.eq.s32.totalorder (!%p126_p9), %v830_v25, 0  ;;  %vm186_vm3 = vcmp.eq.s32.totalorder (!%p126_p9), %v830_v25, 15  ;;  %vm346_vm4 = vcmp.ge.s32.totalorder (!%p126_p9), %v830_v25, 1  ;;  %vm310_vm5 = vcmp.lt.s32.totalorder (!%p126_p9), %v830_v25, 127  ;;  %s752_s14 = smov (!%p126_p9), 123   ;;  %s753_s16 = smov (!%p126_p9), 5  }
  0x12   : > { %vm199_vm6 = vmor (!%p126_p9), %vm185_vm2, %vm186_vm3  ;;  %vm229_vm7 = vcmp.lt.s32.totalorder (!%p126_p9), %v832_v30, 1  ;;  %vm224_vm8 = vcmp.lt.s32.totalorder (!%p126_p9), %v832_v30, 7  ;;  %vm187_vm9 = vcmp.eq.s32.totalorder (!%p126_p9), %v832_v30, 0  ;;  %vm270_vm11 = vcmp.lt.s32.totalorder (!%p126_p9), %v830_v25, 16 }
  0x13   : > { %vm355_vm12 = vcmp.ge.s32.totalorder (!%p126_p9), %v830_v25, 2  ;;  %vm319_vm13 = vcmp.lt.s32.totalorder (!%p126_p9), %v830_v25, 126  ;;  %vm328_vm14 = vcmp.lt.s32.totalorder (!%p126_p9), %v830_v25, 124  ;;  %vm364_vm15 = vcmp.ge.s32.totalorder (!%p126_p9), %v830_v25, 4 }
  0x15   : > { %s153_s21 = scalar_select %p152_p10, %s793_s13, 1 }
  0x17   : > { %s584_s22 = smul.u32 48, %s153_s21  ;;  %s582_s23 = sshll.u32 %s153_s21, 4 }
  0x18   : > { %s161_s26 = scalar_lea.vmem %s986_s1, %s582_s23  ;;  %s149_s23 = sand.u32 1, %s735_s10  }
  0x19   : > { %s156_s29 = scalar_lea.vmem %s985_s0, %s584_s22  ;;  %v298_v3 = vld [vmem:[%s161_s26] sm:$0xff]  ;;  %v299_v4 = vld [vmem:[%s161_s26 + $0x8] sm:$0xff]  ;;  %s567_s24 = sshll.u32 %s149_s23, 4 }
  0x1a   : > { %v162_v0 = vld [vmem:[%s156_s29] sm:$0xff]  ;;  %v571_v1 = vld [vmem:[%s156_s29 + $0x10] sm:$0xff]  ;;  %v163_v8 = vld [vmem:[%s156_s29 + $0x8] sm:$0xff]  ;;  %vm300_vm0 = vcmp.gt.f32.partialorder %v298_v3, 0.0  ;;  %vm301_vm1 = vcmp.gt.f32.partialorder %v299_v4, 0.0  ;;  %s583_s26 = sshll.u32 %s793_s13, 8 }
  0x1b   : > { %v573_v2 = vld [vmem:[%s156_s29 + $0x20] sm:$0xff]  ;;  %v170_v5 = vmul.f32 0.299, %v162_v0  ;;  %v172_v6 = vmul.f32 0.587, %v571_v1  ;;  %v572_v9 = vld [vmem:[%s156_s29 + $0x18] sm:$0xff] }
  0x1c   : > { %v176_v7 = vmul.f32 0.114, %v573_v2  ;;  %v574_v10 = vld [vmem:[%s156_s29 + $0x28] sm:$0xff]  ;;  %v171_v12 = vmul.f32 0.299, %v163_v8  ;;  %v575_v19 = vsel %vm300_vm0, 1.0, %v747_v18 }
  0x1d   : > { %v174_v11 = vadd.f32 %v172_v6, %v170_v5  ;;  %v173_v13 = vmul.f32 0.587, %v572_v9  ;;  %v177_v14 = vmul.f32 0.114, %v574_v10  ;;  %v576_v20 = vsel %vm301_vm1, 1.0, %v747_v18  ;;  %s151_s27 = scalar_lea.vmem [#allocation2], %s567_s24 }
  0x1e   : > { %v644_v21 = vpack.i.bf16 %v576_v20, %v575_v19  ;;  %s489_s28 = sshll.u32 %s151_s27, 4  ;;  %s944_s13 = scalar_lea.sflag [#allocation3], %s149_s23  ;;  %s938_s28 = int_to_ptr.vmem [resolvable:$true] %s489_s28 }
  0x1f   : > { %v178_v15 = vadd.f32 %v176_v7, %v174_v11  ;;  %v175_v16 = vadd.f32 %v173_v13, %v171_v12 }
  0x21   : > { %191 = vrot.lane.b32.xlu1 %v178_v15, %s745_s30  ;;  %195 = vrot.lane.b32.xlu0 %v178_v15, %s746_s3  ;;  %v179_v17 = vadd.f32 %v177_v14, %v175_v16  ;;  %v212_v29 = vmul.f32 2.0, %v178_v15 }
  0x23   : > { %v213_v27 = vmul.f32 2.0, %v179_v17 }
  0x25   : > { %193 = vrot.lane.b32.xlu1 %v179_v17, %s745_s30  ;;  %197 = vrot.lane.b32.xlu0 %v179_v17, %s746_s3 }
  0x29   : > { %645 = vrot.lane.b32.xlu1 %v644_v21, %s746_s3  ;;  %640 = vrot.lane.b32.xlu0 %v644_v21, %s745_s30  ;;  %s936_s3 = scalar_lea.hbm %s987_s2, %s583_s26 }
  0x93   : > { %v192_v23 = vpop.permute.xlu1 %191  ;;  %v196_v24 = vpop.permute.xlu0 %195 }
  0x94   : > { %v208_v35 = vadd.f32 %v196_v24, %v178_v15  ;;  %v214_v39 = vadd.f32 %v212_v29, %v196_v24  ;;  %v204_v42 = vadd.f32 %v192_v23, %v178_v15  ;;  %v200_v43 = vsub.f32 %v192_v23, %v196_v24 }
  0x96   : > { %v210_v50 = vmul.f32 2.0, %v208_v35  ;;  %v216_v54 = vadd.f32 %v214_v39, %v192_v23  ;;  %v202_v60 = vsel %vm199_vm6, 0.0, %v200_v43  ;;  %v206_v63 = vmul.f32 2.0, %v204_v42 }
  0x97   : > { %v194_v26 = vpop.permute.xlu1 %193  ;;  %v198_v28 = vpop.permute.xlu0 %197  ;;  %v227_v3 = vrot.slane %v202_v60, 7  ;;  %v222_v5 = vrot.slane %v202_v60, 1  ;;  %v240_v13 = vmul.f32 2.0, %v202_v60 }
  0x98   : > { %v209_v31 = vadd.f32 %v198_v28, %v179_v17  ;;  %v215_v32 = vadd.f32 %v213_v27, %v198_v28  ;;  %v201_v40 = vsub.f32 %v194_v26, %v198_v28  ;;  %v205_v44 = vadd.f32 %v194_v26, %v179_v17 }
  0x99   : > { %v218_v1 = vsel %vm186_vm3, %v210_v50, %v216_v54 }
  0x9a   : > { %v211_v46 = vmul.f32 2.0, %v209_v31  ;;  %v217_v47 = vadd.f32 %v215_v32, %v194_v26  ;;  %v203_v55 = vsel %vm199_vm6, 0.0, %v201_v40  ;;  %v207_v58 = vmul.f32 2.0, %v205_v44 }
  0x9b   : > { %v646_v33 = vpop.permute.xlu1 %645  ;;  %v641_v34 = vpop.permute.xlu0 %640  ;;  %v228_v0 = vrot.slane %v203_v55, 7  ;;  %v223_v2 = vrot.slane %v203_v55, 1  ;;  %v241_v6 = vmul.f32 2.0, %v203_v55  ;;  %v220_v7 = vsel %vm185_vm2, %v206_v63, %v218_v1 }
  0x9c   : > { %v648_v36 = vunpack.i.h.bf16 %v646_v33  ;;  %v647_v37 = vunpack.i.l.bf16 %v646_v33  ;;  %v643_v38 = vunpack.i.h.bf16 %v641_v34  ;;  %v642_v41 = vunpack.i.l.bf16 %v641_v34 }
  0x9d   : > { %v219_v61 = vsel %vm186_vm3, %v211_v46, %v217_v47  ;;  %v230_v8 = vsel %vm229_vm7, %v227_v3, %v228_v0  ;;  %v231_v9 = vsel %vm229_vm7, %v228_v0, %v227_v3  ;;  %v225_v12 = vsel %vm224_vm8, %v222_v5, %v223_v2 }
  0x9e   : > { %v348_v45 = vsel %vm346_vm4, %v648_v36, 0.0  ;;  %v347_v49 = vsel %vm346_vm4, %v647_v37, 0.0  ;;  %v312_v52 = vsel %vm310_vm5, %v643_v38, 0.0  ;;  %v311_v53 = vsel %vm310_vm5, %v642_v41, 0.0 }
  0x9f   : > { %v840_v48 = vmax.f32 %v576_v20, %v348_v45  ;;  %v848_v51 = vmax.f32 %v575_v19, %v347_v49  ;;  %v850_v56 = vmax.f32 %v576_v20, %v312_v52  ;;  %v852_v57 = vmax.f32 %v575_v19, %v311_v53 }
  0xa0   : > { %v221_v4 = vsel %vm185_vm2, %v207_v58, %v219_v61  ;;  %v250_v14 = vrot.slane %v220_v7, 1  ;;  %v254_v15 = vrot.slane %v220_v7, 7  ;;  %v237_v16 = vadd.f32 %v230_v8, %v203_v55 }
  0xa1   : > { %v654_v59 = vpack.i.bf16 %v840_v48, %v848_v51  ;;  %v649_v62 = vpack.i.bf16 %v850_v56, %v852_v57  ;;  %v251_v10 = vrot.slane %v221_v4, 1  ;;  %v255_v11 = vrot.slane %v221_v4, 7 }
  0xa2   : > { %v243_v17 = vadd.f32 %v241_v6, %v230_v8  ;;  %v875_v19 = vadd.s32 8, %v832_v30  ;;  %v232_v20 = vadd.f32 %v225_v12, %v202_v60  ;;  %v242_v21 = vadd.f32 %v240_v13, %v231_v9 }
  0xa3   : > { %655 = vrot.lane.b32.xlu1 %v654_v59, %s748_s4  ;;  %650 = vrot.lane.b32.xlu0 %v649_v62, %s749_s5  ;;  %v252_v22 = vsel %vm224_vm8, %v250_v14, %v251_v10  ;;  %v253_v23 = vsel %vm224_vm8, %v251_v10, %v250_v14  ;;  %v256_v24 = vsel %vm229_vm7, %v254_v15, %v255_v11  ;;  %v239_v28 = vmul.f32 2.0, %v237_v16  ;;  %s681_s4 = scalar_lea.vmem %s938_s28, 256  ;;  %s754_s5 = smov [#allocation2]  }
  0xa4   : > { %v257_v26 = vsel %vm229_vm7, %v255_v11, %v254_v15  ;;  %v226_v27 = vsel %vm224_vm8, %v223_v2, %v222_v5  ;;  %v234_v31 = vmul.f32 2.0, %v232_v20  ;;  %v244_v32 = vadd.f32 %v242_v21, %v225_v12  ;;  %p682_p11 = scmp.ne.s32.totalorder %s938_s28, %s681_s4 }
  0xa5   : > { %v245_v29 = vadd.f32 %v243_v17, %v226_v27  ;;  %v260_v33 = vsub.f32 %v252_v22, %v257_v26  ;;  %v261_v34 = vsub.f32 %v253_v23, %v256_v24  ;;  %vm190_vm10 = vcmp.eq.s32.totalorder %v875_v19, 15 }
  0xa6   : > { %v248_v36 = vsel %vm187_vm9, %v234_v31, %v244_v32  ;;  %vm337_vm2 = vcmp.lt.s32.totalorder %v830_v25, 123  ;;  %vm373_vm3 = vcmp.ge.s32.totalorder %v830_v25, 5  ;;  %vm385_vm4 = vcmp.lt.s32.totalorder %v875_v19, 15  ;;  %p683_p12 = pnand %p682_p11, %p810_p5 }
  0xa7   : > { %v247_v35 = vsel %vm190_vm10, %v239_v28, %v245_v29  ;;  %v262_v37 = vsel %vm187_vm9, 0.0, %v260_v33  ;;  %v263_v38 = vsel %vm190_vm10, 0.0, %v261_v34  ;;  %v264_v39 = vmul.f32 %v248_v36, %v248_v36 }
  0xa8   : > { %v265_v40 = vmul.f32 %v247_v35, %v247_v35  ;;  %v266_v41 = vmul.f32 %v262_v37, %v262_v37  ;;  %v267_v42 = vmul.f32 %v263_v38, %v263_v38  ;;  %vm427_vm5 = vcmp.ge.s32.totalorder %v832_v30, 1  ;;  %p684_p13 = pneg %p683_p12 }
  0xa9   : > { %vm392_vm6 = vcmp.lt.s32.totalorder %v832_v30, 6  ;;  %vm435_vm9 = vcmp.lt.s32.totalorder %v832_v30, 2  ;;  %vm438_vm10 = vcmp.ge.s32.totalorder %v832_v30, 2 }
  0xaa   : > { %v889_v43 = vadd.f32 %v266_v41, %v264_v39  ;;  %v891_v44 = vadd.f32 %v267_v42, %v265_v40 }
  0xac   : > { %v271_v45 = vsel %vm270_vm11, %v889_v43, 0.0  ;;  %v272_v46 = vsel %vm270_vm11, %v891_v44, 0.0  ;;  %vm407_vm11 = vcmp.lt.s32.totalorder %v875_v19, 12 }
  0xad   : > { %v273_v47 = vmax.f32 %v271_v45, %v272_v46 }
  0xc2   : > { %274 = vmax.xlane.f32.xlu0 %v273_v47 }
 0x115   : > { %v656_v49 = vpop.permute.xlu1 %655  ;;  %v651_v53 = vpop.permute.xlu0 %650 }
 0x116   : > { %v658_v50 = vunpack.i.h.bf16 %v656_v49  ;;  %v657_v52 = vunpack.i.l.bf16 %v656_v49  ;;  %v653_v54 = vunpack.i.h.bf16 %v651_v53  ;;  %v652_v55 = vunpack.i.l.bf16 %v651_v53 }
 0x118   : > { %v357_v58 = vsel %vm355_vm12, %v658_v50, 0.0  ;;  %v356_v59 = vsel %vm355_vm12, %v657_v52, 0.0  ;;  %v321_v60 = vsel %vm319_vm13, %v653_v54, 0.0  ;;  %v320_v61 = vsel %vm319_vm13, %v652_v55, 0.0 }
 0x119   : > { %v323_v62 = vmax.f32 %v850_v56, %v321_v60  ;;  %v322_v63 = vmax.f32 %v852_v57, %v320_v61  ;;  %v359_v0 = vmax.f32 %v840_v48, %v357_v58  ;;  %v358_v1 = vmax.f32 %v848_v51, %v356_v59 }
 0x11a   : > { %vm448_vm12 = vcmp.ge.s32.totalorder %v832_v30, 4  ;;  %vm414_vm13 = vcmp.lt.s32.totalorder %v832_v30, 3 }
 0x11b   : > { %v659_v2 = vpack.i.bf16 %v323_v62, %v322_v63  ;;  %v664_v3 = vpack.i.bf16 %v359_v0, %v358_v1 }
 0x11d   : > { %660 = vrot.lane.b32.xlu1 %v659_v2, %s750_s6  ;;  %s685_s6 = sshll.u32 %s754_s5, 4  ;;  %s686_s6 = int_to_ptr.vmem [resolvable:$false] %s685_s6 }
 0x11e   : > { %p688_p0 = scmp.lt.s32.totalorder %s938_s28, %s686_s6 }
 0x121   : > { %665 = vrot.lane.b32.xlu1 %v664_v3, %s751_s7  ;;  %s687_s7 = scalar_lea.vmem %s686_s6, 512 }
 0x122   : > { %p689_p1 = scmp.lt.s32.totalorder %s687_s7, %s681_s4 }
 0x124   : > { %p690_p2 = por %p689_p1, %p688_p0 }
 0x126   : > { %p691_p3 = pnand %p690_p2, %p684_p13 }
 0x14f   : > { %v275_v4 = vpop.xlane.xlu0 %274 }
 0x150   : > { %v276_v5 = vrot.slane %v275_v4, 4 }
 0x152   : > { %v277_v6 = vmax.f32 %v275_v4, %v276_v5 }
 0x154   : > { %v278_v7 = vrot.slane %v277_v6, 2 }
 0x156   : > { %v279_v8 = vmax.f32 %v277_v6, %v278_v7 }
 0x158   : > { %v280_v9 = vrot.slane %v279_v8, 1 }
 0x15a   : > { %v281_v10 = vmax.f32 %v279_v8, %v280_v9 }
 0x15c   : > { %585 = vpush %v281_v10 }
 0x18d   : > { %s586_s8 = spop %585 }
 0x18e   : > { %v283_v56 = vstv %s586_s8 }
 0x18f   : > { %679 = vrsqrt.f32 %v283_v56  ;;  %v661_v48 = vpop.permute.xlu1 %660  ;;  %vm286_vm0 = vcmp.eq.f32.partialorder %v283_v56, inf  ;;  %v289_v29 = vand.u32 2147483648, %v283_v56  ;;  %vm288_vm1 = vcmp.eq.f32.partialorder %v283_v56, 0.0 }
 0x190   : > { %v663_v51 = vunpack.i.h.bf16 %v661_v48  ;;  %v662_v57 = vunpack.i.l.bf16 %v661_v48 }
 0x192   : > { %v330_v11 = vsel %vm328_vm14, %v663_v51, 0.0  ;;  %v329_v12 = vsel %vm328_vm14, %v662_v57, 0.0  ;;  %vm456_vm14 = vcmp.lt.s32.totalorder %v832_v30, 5 }
 0x193   : > { %v332_v13 = vmax.f32 %v323_v62, %v330_v11  ;;  %v331_v14 = vmax.f32 %v322_v63, %v329_v12  ;;  %v666_v15 = vpop.permute.xlu1 %665 }
 0x194   : > { %v668_v16 = vunpack.i.h.bf16 %v666_v15  ;;  %v667_v17 = vunpack.i.l.bf16 %v666_v15 }
 0x195   : > { %v669_v20 = vpack.i.bf16 %v332_v13, %v331_v14 }
 0x196   : > { %v366_v21 = vsel %vm364_vm15, %v668_v16, 0.0  ;;  %v365_v22 = vsel %vm364_vm15, %v667_v17, 0.0  ;;  %vm418_vm15 = vcmp.lt.s32.totalorder %v875_v19, 11 }
 0x197   : > { %v368_v23 = vmax.f32 %v359_v0, %v366_v21  ;;  %v367_v24 = vmax.f32 %v358_v1, %v365_v22  ;;  %670 = vrot.lane.b32.xlu1 %v669_v20, %s752_s14 }
 0x199   : > { %v680_v26 = vpop.eup %679  ;;  %v674_v27 = vpack.i.bf16 %v368_v23, %v367_v24 }
 0x19a   : > { %v285_v28 = vmul.f32 %v680_v26, %v283_v56 }
 0x19b   : > { %675 = vrot.lane.b32.xlu1 %v674_v27, %s753_s16 }
 0x19c   : > { %v287_v31 = vsel %vm286_vm0, %v283_v56, %v285_v28  ;;  %vm459_vm0 = vcmp.ge.s32.totalorder %v832_v30, 5 }
 0x19d   : > { %v290_v32 = vsel %vm288_vm1, %v289_v29, %v287_v31 }
 0x19e   : > { %587 = vpush %v290_v32 }
 0x1cf   : > { %s588_s17 = spop %587 }
 0x1d0   : > { %s292_s21 = sadd.f32 1e-08, %s588_s17 }
 0x1d2   : > { %s293_s22 = smul.f32 0.4, %s292_s21 }
 0x1d4   : > { %s294_s25 = smul.f32 %s293_s22, %s293_s22 }
 0x209   : > { %v671_v33 = vpop.permute.xlu1 %670 }
 0x20a   : > { %v673_v34 = vunpack.i.h.bf16 %v671_v33  ;;  %v672_v35 = vunpack.i.l.bf16 %v671_v33 }
 0x20c   : > { %v339_v37 = vsel %vm337_vm2, %v673_v34, 0.0  ;;  %v338_v38 = vsel %vm337_vm2, %v672_v35, 0.0 }
 0x20d   : > { %v676_v36 = vpop.permute.xlu1 %675  ;;  %v341_v45 = vmax.f32 %v332_v13, %v339_v37  ;;  %v340_v46 = vmax.f32 %v331_v14, %v338_v38 }
 0x20e   : > { %v678_v39 = vunpack.i.h.bf16 %v676_v36  ;;  %v677_v40 = vunpack.i.l.bf16 %v676_v36 }
 0x210   : > { %v375_v41 = vsel %vm373_vm3, %v678_v39, 0.0  ;;  %v374_v42 = vsel %vm373_vm3, %v677_v40, 0.0 }
 0x211   : > { %v377_v47 = vmax.f32 %v368_v23, %v375_v41  ;;  %v376_v49 = vmax.f32 %v367_v24, %v374_v42 }
 0x213   : > { %v378_v50 = vmax.f32 %v340_v46, %v376_v49  ;;  %v379_v52 = vmax.f32 %v341_v45, %v377_v47  ;;  %v295_v49 = vstv %s294_s25 }
 0x214   : > { %vm296_vm1 = vcmp.gt.f32.partialorder %v889_v43, %v295_v49 }
 0x215   : > { %v380_v53 = vrot.slane %v378_v50, 1  ;;  %v381_v54 = vrot.slane %v379_v52, 1  ;;  %v423_v25 = vrot.slane %v378_v50, 7  ;;  %v424_v55 = vrot.slane %v379_v52, 7 }
 0x217   : > { %v382_v58 = vsel %vm224_vm8, %v380_v53, %v381_v54  ;;  %v383_v59 = vsel %vm224_vm8, %v381_v54, %v380_v53  ;;  %v425_v60 = vsel %vm229_vm7, %v423_v25, %v424_v55  ;;  %v426_v61 = vsel %vm229_vm7, %v424_v55, %v423_v25 }
 0x218   : > { %v387_v62 = vsel %vm385_vm4, %v383_v59, 0.0  ;;  %v388_v63 = vmax.f32 %v378_v50, %v382_v58  ;;  %v429_v0 = vsel %vm427_vm5, %v426_v61, 0.0  ;;  %v432_v1 = vmax.f32 %v379_v52, %v425_v60 }
 0x219   : > { %v389_v2 = vmax.f32 %v379_v52, %v387_v62  ;;  %v431_v3 = vmax.f32 %v378_v50, %v429_v0  ;;  %vm396_vm8 = vcmp.lt.s32.totalorder %v875_v19, 14  ;;  %vm403_vm7 = vcmp.lt.s32.totalorder %v832_v30, 4 }
 0x21a   : > { %v390_v4 = vrot.slane %v388_v63, 2  ;;  %v434_v5 = vrot.slane %v432_v1, 6  ;;  %vm297_vm4 = vcmp.gt.f32.partialorder %v891_v44, %v295_v49 }
 0x21b   : > { %v391_v6 = vrot.slane %v389_v2, 2  ;;  %v433_v7 = vrot.slane %v431_v3, 6 }
 0x21d   : > { %v393_v8 = vsel %vm392_vm6, %v390_v4, %v391_v6  ;;  %v394_v9 = vsel %vm392_vm6, %v391_v6, %v390_v4  ;;  %v436_v10 = vsel %vm435_vm9, %v433_v7, %v434_v5  ;;  %v437_v56 = vsel %vm435_vm9, %v434_v5, %v433_v7 }
 0x21e   : > { %v398_v48 = vsel %vm396_vm8, %v394_v9, 0.0  ;;  %v399_v51 = vmax.f32 %v388_v63, %v393_v8  ;;  %v440_v57 = vsel %vm438_vm10, %v437_v56, 0.0  ;;  %v443_v11 = vmax.f32 %v432_v1, %v436_v10 }
 0x21f   : > { %v400_v12 = vmax.f32 %v389_v2, %v398_v48  ;;  %v442_v13 = vmax.f32 %v431_v3, %v440_v57 }
 0x220   : > { %v401_v14 = vrot.slane %v399_v51, 4  ;;  %v445_v15 = vrot.slane %v443_v11, 4 }
 0x221   : > { %v402_v16 = vrot.slane %v400_v12, 4  ;;  %v444_v17 = vrot.slane %v442_v13, 4 }
 0x223   : > { %v404_v20 = vsel %vm403_vm7, %v401_v14, %v402_v16  ;;  %v405_v21 = vsel %vm403_vm7, %v402_v16, %v401_v14  ;;  %v446_v22 = vsel %vm403_vm7, %v444_v17, %v445_v15  ;;  %v447_v23 = vsel %vm403_vm7, %v445_v15, %v444_v17 }
 0x224   : > { %v409_v24 = vsel %vm407_vm11, %v405_v21, 0.0  ;;  %v410_v26 = vmax.f32 %v399_v51, %v404_v20  ;;  %v450_v27 = vsel %vm448_vm12, %v447_v23, 0.0  ;;  %v453_v28 = vmax.f32 %v443_v11, %v446_v22 }
 0x225   : > { %v411_v29 = vmax.f32 %v400_v12, %v409_v24  ;;  %v452_v31 = vmax.f32 %v442_v13, %v450_v27 }
 0x226   : > { %v412_v32 = vrot.slane %v410_v26, 5  ;;  %v455_v33 = vrot.slane %v453_v28, 3 }
 0x227   : > { %v413_v34 = vrot.slane %v411_v29, 5  ;;  %v454_v35 = vrot.slane %v452_v31, 3 }
 0x229   : > { %v415_v36 = vsel %vm414_vm13, %v412_v32, %v413_v34  ;;  %v416_v37 = vsel %vm414_vm13, %v413_v34, %v412_v32  ;;  %v457_v38 = vsel %vm456_vm14, %v454_v35, %v455_v33  ;;  %v458_v39 = vsel %vm456_vm14, %v455_v33, %v454_v35 }
 0x22a   : > { %v420_v40 = vsel %vm418_vm15, %v416_v37, 0.0  ;;  %v421_v41 = vmax.f32 %v410_v26, %v415_v36  ;;  %v461_v42 = vsel %vm459_vm0, %v458_v39, 0.0  ;;  %v464_v45 = vmax.f32 %v453_v28, %v457_v38 }
 0x22b   : > { %v422_v46 = vmax.f32 %v411_v29, %v420_v40  ;;  %v463_v47 = vmax.f32 %v452_v31, %v461_v42 }
 0x22d   : > { %v465_v50 = vmax.f32 %v421_v41, %v463_v47  ;;  %v466_v52 = vmax.f32 %v422_v46, %v464_v45 }
 0x22f   : > { %vm467_vm2 = vcmp.gt.f32.partialorder %v465_v50, 0.0  ;;  %vm468_vm3 = vcmp.gt.f32.partialorder %v466_v52, 0.0 }
 0x230   : > { %vm469_vm5 = vmand %vm296_vm1, %vm467_vm2 }
 0x231   : > { %vm470_vm6 = vmand %vm297_vm4, %vm468_vm3  ;;  %v471_v30 = vsel %vm469_vm5, 1.0, %v747_v18 }
 0x232   : > { %v472_v19 = vsel %vm470_vm6, 1.0, %v747_v18  ;;  %473 = vst [vmem:[%s151_s27] sm:$0xff] %v471_v30 }
 0x233   : > { %474 = vst [vmem:[%s151_s27 + $0x8] sm:$0xff] %v472_v19 }
 0x234   : > { %694 = shalt.err (!%p691_p3)
}
 0x235   : > { %s695_s8 = scalar_lea.hbm %s936_s3, 256  ;;  %s699_s17 = scalar_lea.hbm %s987_s2, 512 }
 0x236   : > { %p696_p4 = scmp.ne.s32.totalorder %s936_s3, %s695_s8  ;;  %p700_p9 = scmp.lt.u32.totalorder %s936_s3, %s987_s2 }
 0x237   : > { %p701_p10 = scmp.lt.u32.totalorder %s699_s17, %s695_s8  ;;  %p703_p12 = scmp.lt.u32.totalorder %s695_s8, %s936_s3 }
 0x238   : > { %p697_p7 = pnand %p696_p4, %p810_p5 }
 0x239   : > { %p702_p11 = por %p701_p10, %p700_p9 }
 0x23a   : > { %p698_p8 = pneg %p697_p7 }
 0x23b   : > { %p704_p13 = por %p703_p12, %p702_p11 }
 0x23d   : > { %p705_p0 = pnand %p704_p13, %p698_p8 }
 0x23f   : > { %708 = shalt.err (!%p705_p0)
}
 0x240   : > { %s755_s23 = smov 128   ;;  %s756_s24 = smov 8  }
 0x241   : > { %589 = dma.vmem_to_hbm [thread:$0]  (%p810_p5), %s938_s28, 256, %s936_s3, %s944_s13, %s755_s23, %s755_s23, %s756_s24  }
 0x242 PF: > { %p595_p1 = scmp.ge.s32.totalorder %s743_s12, 2  ;;  %s504_s25 = sand.u32 1, %s731_s9  }
 0x243   : > { %s505_s26 = scalar_lea.sflag [#allocation3], %s504_s25 }
 0x244   : > { %p592_p2 = pnand %p595_p1, %p814_p6 }
 0x246   : > { %726 = dma.done.wait (!%p592_p2), %s505_s26, 256  }
 0x247   : > { %728 = vsyncadd (!%p592_p2), %s505_s26, 4294967040  ;;  %p12_p3 = scmp.ge.s32.totalorder %s797_s15, 4   ;;  %s990_s9 = smov %s735_s10 }
 0x248   : > { %s991_s10 = smov %s739_s11  ;;  %s992_s11 = smov %s808_s18 }
 0x249   : > { %s993_s12 = smov %s797_s15  ;;  %14 = sbr.rel (!%p12_p3) target bundleno = 3 (0x3), region = 68 }
 0x250   :  { %510 = vsyncpa [#allocation3], 1 }
 0x251   :  { %512 = vsyncpa [#allocation3 + $0x1], 1 }

</bundles_post_ra>
